<compile_context>
chip_gen: v5e
topology: v5e:2x2
jax: 0.10.0
libtpu: 0.0.40
codegen_flags: <defaults>
</compile_context>

<pallas_src>
import functools

import jax
import jax.numpy as jnp
from jax.experimental import pallas as pl
from jax.experimental.pallas import tpu as pltpu


def _cond_entropy_kernel(x_ref, out_ref, *, bm, total_batch):
    i = pl.program_id(0)
    x = x_ref[...].astype(jnp.float32)                       # (bm, C)

    # Numerically stable: z <= 0 after max subtraction.
    m = jnp.max(x, axis=1, keepdims=True)                    # (bm, 1)
    z = x - m
    e = jnp.exp(z)                                           # single EUP pass
    s = jnp.sum(e, axis=1, keepdims=True)                    # (bm, 1)
    ez = jnp.sum(e * z, axis=1, keepdims=True)               # (bm, 1)
    # sum_c softmax(x)*log_softmax(x) == sum_c(e*z)/s - log(s)
    per_row = ez / s - jnp.log(s)                            # (bm, 1)

    # Mask padded rows of the (possibly partial) last tile BEFORE the row sum,
    # so stale-VMEM garbage (NaN/Inf) cannot leak into the tile partial.
    row = i * bm + jax.lax.broadcasted_iota(jnp.int32, (bm, 1), 0)
    masked = jnp.where(row < total_batch, per_row, 0.0)      # (bm, 1)
    partial = jnp.sum(masked)                                # scalar per-tile partial

    # Lane-dense (8, 128) output block: partial at [0, 0], zeros elsewhere.
    r = jax.lax.broadcasted_iota(jnp.int32, (8, 128), 0)
    c = jax.lax.broadcasted_iota(jnp.int32, (8, 128), 1)
    out_ref[...] = jnp.where((r == 0) & (c == 0), partial, 0.0)


def _round_up(n, m):
    return ((n + m - 1) // m) * m


def _vmem_limit_bytes():
    """Half of physical VMEM: 64 MiB on v5e/v6e, 32 MiB on v7x."""
    try:
        cap = int(pltpu.get_tpu_info().vmem_capacity_bytes)
    except Exception:
        cap = 64 * 1024 * 1024                 # conservative (v7x-sized) fallback
    return max(16 * 1024 * 1024, cap // 2)


def _pick_bm(B, C, itemsize, vmem_limit):
    """Largest batch tile (multiple of 8) fitting a layout/dtype-aware VMEM budget."""
    c_pad = _round_up(C, 128)                  # lane padding of the VMEM tile
    # 2x double-buffered input DMA tiles at the input itemsize, plus ~4
    # full-tile f32 temporaries (x_f32/z/e/e*z) that Mosaic materializes.
    bytes_per_row = 2 * c_pad * itemsize + 4 * c_pad * 4
    budget = int(vmem_limit * 0.6)             # headroom for output bufs / misc
    bm = budget // max(1, bytes_per_row)
    bm = max(8, (bm // 8) * 8)
    bm = min(bm, _round_up(B, 8))              # no point tiling past the batch
    return bm


def conditional_entropy_loss(x, *, bm=None):
    """x: (B, C) logits (f32 or bf16). Returns the scalar loss (PyTorch semantics)."""
    x = jnp.asarray(x)
    assert x.ndim == 2, "expected (batch, classes) logits"
    B, C = x.shape
    itemsize = jnp.dtype(x.dtype).itemsize
    vmem_limit = _vmem_limit_bytes()
    if bm is None:
        bm = _pick_bm(B, C, itemsize, vmem_limit)
    bm = max(8, (bm // 8) * 8)
    num_tiles = pl.cdiv(B, bm)

    kernel = functools.partial(_cond_entropy_kernel, bm=bm, total_batch=B)
    cost = pl.CostEstimate(
        flops=int(5 * B * C),
        transcendentals=int(B * C + B),
        bytes_accessed=int(B * C * itemsize + num_tiles * 8 * 128 * 4),
    )

    partials = pl.pallas_call(
        kernel,
        out_shape=jax.ShapeDtypeStruct((num_tiles * 8, 128), jnp.float32),
        grid_spec=pltpu.PrefetchScalarGridSpec(
            num_scalar_prefetch=0,
            grid=(num_tiles,),
            in_specs=[pl.BlockSpec((bm, C), lambda i: (i, 0))],
            out_specs=pl.BlockSpec((8, 128), lambda i: (i, 0)),
        ),
        compiler_params=pltpu.CompilerParams(
            dimension_semantics=("parallel",),   # independent tiles
            vmem_limit_bytes=vmem_limit,
        ),
        cost_estimate=cost,
    )(x)

    # Tiny final reduction (only per-tile partials are nonzero) + mean(dim=0).
    return -jnp.sum(partials) / jnp.float32(B)


def _reference(x):
    logp = jax.nn.log_softmax(x, axis=1)
    p = jax.nn.softmax(x, axis=1)
    b = jnp.sum(p * logp, axis=1)
    return -1.0 * jnp.mean(b, axis=0)


if __name__ == "__main__":
    key = jax.random.PRNGKey(0)
    k1, k2, k3 = jax.random.split(key, 3)

    # Deliberately awkward small shape: B not a multiple of 8, C not a multiple
    # of 128 -> exercises the masked partial last tile + full-extent lane block.
    x1 = jax.random.normal(k1, (37, 100), dtype=jnp.float32)
    loss1 = jax.block_until_ready(jax.jit(conditional_entropy_loss)(x1))
    ref1 = _reference(x1)
    assert jnp.allclose(loss1, ref1, atol=1e-5, rtol=1e-5), (loss1, ref1)

    # Multi-tile grid path (forced small tile) to exercise the parallel grid
    # and per-tile partial outputs.
    x2 = jax.random.normal(k2, (64, 128), dtype=jnp.float32)
    loss2 = jax.block_until_ready(
        jax.jit(functools.partial(conditional_entropy_loss, bm=16))(x2))
    ref2 = _reference(x2)
    assert jnp.allclose(loss2, ref2, atol=1e-5, rtol=1e-5), (loss2, ref2)

    # bf16 pass-through (f32 math in-kernel; dtype-aware DMA budget).
    x3 = jax.random.normal(k3, (40, 32), dtype=jnp.float32).astype(jnp.bfloat16)
    loss3 = jax.block_until_ready(jax.jit(conditional_entropy_loss)(x3))
    ref3 = _reference(x3.astype(jnp.float32))
    assert jnp.allclose(loss3, ref3, atol=1e-5, rtol=1e-5), (loss3, ref3)

    print("KERNEL_OK")
</pallas_src>

<mosaic_0001>
module attributes {stable_mosaic.version = 11 : i64} {
  func.func @_cond_entropy_kernel(%arg0: i32, %arg1: memref<40x100xf32, #tpu.memory_space<vmem>>, %arg2: memref<8x128xf32, #tpu.memory_space<vmem>>) attributes {dimension_semantics = [#tpu.dimension_semantics<parallel>], iteration_bounds = array<i64: 1>, scalar_prefetch = 0 : i64, scratch_operands = 0 : i64, tpu.core_type = #tpu.core_type<tc>, window_params = [{transform_indices = @transform_0, window_bounds = array<i64: 40, 100>}, {transform_indices = @transform_1, window_bounds = array<i64: 8, 128>}]} {
    %c0 = arith.constant 0 : index
    %c0_0 = arith.constant 0 : index
    %0 = vector.load %arg1[%c0, %c0_0] : memref<40x100xf32, #tpu.memory_space<vmem>>, vector<40x100xf32>
    %cst = arith.constant dense<0xFF800000> : vector<40xf32>
    %1 = vector.multi_reduction <maximumf>, %0, %cst [1] : vector<40x100xf32> to vector<40xf32>
    %2 = vector.shape_cast %1 : vector<40xf32> to vector<40x1xf32>
    %3 = vector.broadcast %2 : vector<40x1xf32> to vector<40x100xf32>
    %4 = arith.subf %0, %3 : vector<40x100xf32>
    %5 = math.exp %4 : vector<40x100xf32>
    %cst_1 = arith.constant dense<0.000000e+00> : vector<40xf32>
    %6 = vector.multi_reduction <add>, %5, %cst_1 [1] : vector<40x100xf32> to vector<40xf32>
    %7 = vector.shape_cast %6 : vector<40xf32> to vector<40x1xf32>
    %8 = arith.mulf %5, %4 : vector<40x100xf32>
    %cst_2 = arith.constant dense<0.000000e+00> : vector<40xf32>
    %9 = vector.multi_reduction <add>, %8, %cst_2 [1] : vector<40x100xf32> to vector<40xf32>
    %10 = vector.shape_cast %9 : vector<40xf32> to vector<40x1xf32>
    %11 = arith.divf %10, %7 : vector<40x1xf32>
    %12 = math.log %7 : vector<40x1xf32>
    %13 = arith.subf %11, %12 : vector<40x1xf32>
    %c40_i32 = arith.constant 40 : i32
    %14 = arith.muli %arg0, %c40_i32 : i32
    %15 = tpu.iota {dimensions = array<i32: 0>} : vector<40x1xi32>
    %16 = vector.broadcast %14 : i32 to vector<40x1xi32>
    %17 = arith.addi %16, %15 : vector<40x1xi32>
    %c37_i32 = arith.constant 37 : i32
    %18 = vector.broadcast %c37_i32 : i32 to vector<40x1xi32>
    %19 = arith.cmpi slt, %17, %18 : vector<40x1xi32>
    %cst_3 = arith.constant 0.000000e+00 : f32
    %20 = vector.broadcast %cst_3 : f32 to vector<40x1xf32>
    %21 = arith.select %19, %13, %20 : vector<40x1xi1>, vector<40x1xf32>
    %22 = vector.shape_cast %21 : vector<40x1xf32> to vector<1x40x1xf32>
    %cst_4 = arith.constant dense<0.000000e+00> : vector<1xf32>
    %23 = vector.multi_reduction <add>, %22, %cst_4 [1, 2] : vector<1x40x1xf32> to vector<1xf32>
    %24 = vector.shape_cast %23 : vector<1xf32> to vector<1x1x1xf32>
    %25 = vector.extract %24[0, 0, 0] : f32 from vector<1x1x1xf32>
    %26 = tpu.iota {dimensions = array<i32: 0>} : vector<8x128xi32>
    %27 = tpu.iota {dimensions = array<i32: 1>} : vector<8x128xi32>
    %c0_i32 = arith.constant 0 : i32
    %28 = vector.broadcast %c0_i32 : i32 to vector<8x128xi32>
    %29 = arith.cmpi eq, %26, %28 : vector<8x128xi32>
    %c0_i32_5 = arith.constant 0 : i32
    %30 = vector.broadcast %c0_i32_5 : i32 to vector<8x128xi32>
    %31 = arith.cmpi eq, %27, %30 : vector<8x128xi32>
    %32 = arith.andi %29, %31 : vector<8x128xi1>
    %cst_6 = arith.constant 0.000000e+00 : f32
    %33 = vector.broadcast %25 : f32 to vector<8x128xf32>
    %34 = vector.broadcast %cst_6 : f32 to vector<8x128xf32>
    %35 = arith.select %32, %33, %34 : vector<8x128xi1>, vector<8x128xf32>
    %c0_7 = arith.constant 0 : index
    %c0_8 = arith.constant 0 : index
    %36 = vector.load %arg2[%c0_7, %c0_8] : memref<8x128xf32, #tpu.memory_space<vmem>>, vector<8x128xf32>
    tpu.vector_store %arg2[%c0_7, %c0_8], %35 {strides = array<i32>} : memref<8x128xf32, #tpu.memory_space<vmem>>, vector<8x128xf32>,
    return
  }
  func.func @transform_0(%arg0: i32) -> (i32, i32) {
    %c0_i32 = arith.constant 0 : i32
    %c0_i32_0 = arith.constant 0 : i32
    return %arg0, %c0_i32 : i32, i32
  }
  func.func @transform_1(%arg0: i32) -> (i32, i32) {
    %c0_i32 = arith.constant 0 : i32
    %c0_i32_0 = arith.constant 0 : i32
    return %arg0, %c0_i32 : i32, i32
  }
}

</mosaic_0001>

<bundles_post_ra>
// kernel: conditional_entropy_loss.1
= control target key start
LH: loop header
LB: loop body
LE: loop exit
PB: predicated region body
PF: predicated region fallthrough
CT: control target
= control target key end

     0   :  { %6 = vsyncpa [#allocation3], 0  ;;  %s301_s9 = smov [#allocation2]   ;;  %s302_s11 = smov 128   ;;  %s404_s0 = inlined_call_operand.hbm [shape: f32[37,100], index: 0, kind: input, shape index: {}]   ;;  %s405_s1 = inlined_call_operand.vmem [shape: f32[8,128], index: 1, kind: output, shape index: {}]  }
   0x1   :  { %s11_s8 = sshll.u32 %s404_s0, 4  ;;  %s13_s10 = sshll.u32 %s301_s9, 4  ;;  %s12_s8 = int_to_ptr.hbm [resolvable:$true] %s11_s8  ;;  %s14_s10 = int_to_ptr.vmem [resolvable:$true] %s13_s10 }
   0x2   :  { %s303_s12 = smov 8  }
   0x3   :  { %19 = dma.hbm_to_vmem [thread:$0]  %s12_s8, 640, %s14_s10, [#allocation3], %s302_s11, %s302_s11, %s303_s12  }
   0x4   :  { %299 = dma.done.wait [#allocation3], 640  }
   0x5   :  { %300 = vsyncadd [#allocation3], 4294966656  ;;  %vm29_vm0 = vcmask 818176   ;;  %v26_v0 = vld [vmem:[#allocation2 + $0x10] sm:$0xff]  ;;  %v24_v1 = vld [vmem:[#allocation2] sm:$0xff]  ;;  %v186_v62 = vlaneseq }
   0x6   :  { %v28_v2 = vld [vmem:[#allocation2 + $0x20] sm:$0xff]  ;;  %v36_v3 = vsel %vm29_vm0, %v26_v0, -inf  ;;  %v30_v4 = vsel %vm29_vm0, %v24_v1, -inf  ;;  %v27_v6 = vld [vmem:[#allocation2 + $0x18] sm:$0xff]  ;;  %v25_v7 = vld [vmem:[#allocation2 + $0x8] sm:$0xff] }
   0x7   :  { %v42_v5 = vsel %vm29_vm0, %v28_v2, -inf  ;;  %37 = vmax.xlane.f32.xlu1 %v36_v3  ;;  %31 = vmax.xlane.f32.xlu0 %v30_v4  ;;  %v39_v8 = vsel %vm29_vm0, %v27_v6, -inf  ;;  %v33_v9 = vsel %vm29_vm0, %v25_v7, -inf }
   0x8   :  { %43 = vmax.xlane.f32.xlu2 %v42_v5 }
   0xf   :  { %40 = vmax.xlane.f32.xlu1 %v39_v8  ;;  %34 = vmax.xlane.f32.xlu0 %v33_v9 }
  0x7a   :  { %v38_v10 = vpop.xlane.xlu1 %37  ;;  %v32_v11 = vpop.xlane.xlu0 %31 }
  0x7b   :  { %v47_v12 = vsub.f32 %v26_v0, %v38_v10  ;;  %v45_v13 = vsub.f32 %v24_v1, %v32_v11  ;;  %v44_v18 = vpop.xlane.xlu2 %43 }
  0x7c   :  { %v49_v25 = vsub.f32 %v28_v2, %v44_v18 }
  0x7d   :  { %v54_v14 = vmul.f32 1.442695, %v47_v12  ;;  %v50_v15 = vmul.f32 1.442695, %v45_v13 }
  0x7e   :  { %v58_v28 = vmul.f32 1.442695, %v49_v25 }
  0x7f   :  { %245 = vpow2.f32 %v54_v14 }
  0x80   :  { %247 = vpow2.f32 %v50_v15 }
  0x82   :  { %v41_v16 = vpop.xlane.xlu1 %40  ;;  %v35_v17 = vpop.xlane.xlu0 %34 }
  0x83   :  { %v48_v19 = vsub.f32 %v27_v6, %v41_v16  ;;  %v46_v20 = vsub.f32 %v25_v7, %v35_v17 }
  0x85   :  { %v246_v21 = vpop.eup %245  ;;  %v56_v22 = vmul.f32 1.442695, %v48_v19  ;;  %v52_v23 = vmul.f32 1.442695, %v46_v20 }
  0x86   :  { %v248_v24 = vpop.eup %247  ;;  %v66_v26 = vsel %vm29_vm0, %v246_v21, 0.0  ;;  %v77_v42 = vmul.f32 %v246_v21, %v47_v12 }
  0x87   :  { %249 = vpow2.f32 %v56_v22  ;;  %67 = vadd.xlane.f32.xlu1 %v66_v26  ;;  %v60_v27 = vsel %vm29_vm0, %v248_v24, 0.0  ;;  %v75_v29 = vmul.f32 %v248_v24, %v45_v13  ;;  %v361_v13 = vshrl.u32 %v186_v62, 7 }
  0x88   :  { %251 = vpow2.f32 %v52_v23  ;;  %61 = vadd.xlane.f32.xlu2 %v60_v27  ;;  %v86_v44 = vsel %vm29_vm0, %v77_v42, 0.0 }
  0x89   :  { %253 = vpow2.f32 %v58_v28  ;;  %v80_v32 = vsel %vm29_vm0, %v75_v29, 0.0 }
  0x8d   :  { %v250_v30 = vpop.eup %249 }
  0x8e   :  { %v252_v31 = vpop.eup %251  ;;  %v69_v33 = vsel %vm29_vm0, %v250_v30, 0.0  ;;  %v78_v35 = vmul.f32 %v250_v30, %v48_v19 }
  0x8f   :  { %81 = vadd.xlane.f32.xlu1 %v80_v32  ;;  %v63_v34 = vsel %vm29_vm0, %v252_v31, 0.0  ;;  %v76_v36 = vmul.f32 %v252_v31, %v46_v20  ;;  %v254_v37 = vpop.eup %253 }
  0x90   :  { %70 = vadd.xlane.f32.xlu2 %v69_v33  ;;  %64 = vadd.xlane.f32.xlu0 %v63_v34  ;;  %v72_v38 = vsel %vm29_vm0, %v254_v37, 0.0  ;;  %v89_v39 = vsel %vm29_vm0, %v78_v35, 0.0  ;;  %v79_v41 = vmul.f32 %v254_v37, %v49_v25 }
  0x91   :  { %v83_v40 = vsel %vm29_vm0, %v76_v36, 0.0 }
  0x92   :  { %v92_v43 = vsel %vm29_vm0, %v79_v41, 0.0 }
  0x97   :  { %90 = vadd.xlane.f32.xlu1 %v89_v39 }
  0x98   :  { %84 = vadd.xlane.f32.xlu2 %v83_v40  ;;  %73 = vadd.xlane.f32.xlu0 %v72_v38 }
  0xa0   :  { %93 = vadd.xlane.f32.xlu2 %v92_v43  ;;  %87 = vadd.xlane.f32.xlu0 %v86_v44 }
  0xfa   :  { %v68_v45 = vpop.xlane.xlu1 %67 }
  0xfb   :  { %255 = vrcp.f32 %v68_v45  ;;  %v62_v46 = vpop.xlane.xlu2 %61  ;;  %v134_v54 = vand.u32 2147483647, %v68_v45  ;;  %v136_v55 = vand.u32 2147483648, %v68_v45  ;;  %vm130_vm3 = vweird.f32 %v68_v45 }
  0xfc   :  { %257 = vrcp.f32 %v62_v46  ;;  %v104_v57 = vand.u32 2147483647, %v62_v46  ;;  %v106_v60 = vand.u32 2147483648, %v62_v46  ;;  %vm100_vm2 = vweird.f32 %v62_v46 }
  0xfd   :  { %vm339_vm4 = vcmp.eq.f32.partialorder %v134_v54, 8.507059e+37  ;;  %v137_v1 = vor.u32 1.1754944e-38, %v136_v55 }
  0xfe   :  { %vm347_vm6 = vcmp.eq.f32.partialorder %v104_v57, 8.507059e+37  ;;  %v107_v11 = vor.u32 1.1754944e-38, %v106_v60 }
 0x101   :  { %v332_v47 = vpop.eup %255 }
 0x102   :  { %v258_v48 = vpop.eup %257  ;;  %v126_v49 = vmul.f32 %v332_v47, %v68_v45  ;;  %vm131_vm7 = vweird.f32 %v332_v47  ;;  %v82_v10 = vpop.xlane.xlu1 %81 }
 0x103   :  { %v96_v50 = vmul.f32 %v258_v48, %v62_v46  ;;  %v71_v51 = vpop.xlane.xlu2 %70  ;;  %v335_v52 = vpop.xlane.xlu0 %64  ;;  %vm101_vm1 = vweird.f32 %v258_v48  ;;  %vm369_vm10 = vmor %vm130_vm3, %vm131_vm7  ;;  %vm229_vm7 = vcmp.eq.s32.totalorder %v361_v13, 0 }
 0x104   :  { %259 = vrcp.f32 %v71_v51  ;;  %v127_v58 = vsub.f32 1.0, %v126_v49  ;;  %vm343_vm5 = vmor %vm100_vm2, %vm101_vm1  ;;  %vm145_vm8 = vweird.f32 %v71_v51  ;;  %v149_v15 = vand.u32 2147483647, %v71_v51 }
 0x105   :  { %v97_v53 = vsub.f32 1.0, %v96_v50  ;;  %261 = vrcp.f32 %v335_v52  ;;  %v151_v16 = vand.u32 2147483648, %v71_v51  ;;  %v121_v20 = vand.u32 2147483648, %v335_v52 }
 0x106   :  { %263 = vlog2.f32 %v62_v46  ;;  %v128_v61 = vmul.f32 %v332_v47, %v127_v58  ;;  %v119_v23 = vand.u32 2147483647, %v335_v52  ;;  %vm115_vm12 = vweird.f32 %v335_v52 }
 0x107   :  { %v98_v56 = vmul.f32 %v258_v48, %v97_v53  ;;  %265 = vlog2.f32 %v68_v45  ;;  %vm150_vm14 = vcmp.eq.f32.partialorder %v149_v15, 8.507059e+37  ;;  %v152_v31 = vor.u32 1.1754944e-38, %v151_v16 }
 0x108   :  { %v129_v9 = vadd.f32 %v332_v47, %v128_v61  ;;  %v122_v36 = vor.u32 1.1754944e-38, %v121_v20  ;;  %vm120_vm0 = vcmp.eq.f32.partialorder %v119_v23, 8.507059e+37  ;;  %vm208_vm1 = vcmask 7168  }
 0x109   :  { %v99_v59 = vadd.f32 %v258_v48, %v98_v56  ;;  %v191_v58 = vadd.s32 32, %v361_v13 }
 0x10a   :  { %v260_v63 = vpop.eup %259  ;;  %v133_v24 = vsel %vm369_vm10, %v332_v47, %v129_v9 }
 0x10b   :  { %v262_v2 = vpop.eup %261  ;;  %v141_v5 = vmul.f32 %v260_v63, %v71_v51  ;;  %v351_v6 = vpop.xlane.xlu0 %73  ;;  %v103_v7 = vsel %vm343_vm5, %v258_v48, %v99_v59  ;;  %vm146_vm9 = vweird.f32 %v260_v63  ;;  %v138_v38 = vsel %vm339_vm4, %v137_v1, %v133_v24 }
 0x10c   :  { %v111_v8 = vmul.f32 %v262_v2, %v335_v52  ;;  %267 = vrcp.f32 %v351_v6  ;;  %v264_v14 = vpop.eup %263  ;;  %v108_v18 = vsel %vm347_vm6, %v107_v11, %v103_v7  ;;  %vm116_vm11 = vweird.f32 %v262_v2  ;;  %vm379_vm13 = vmor %vm145_vm8, %vm146_vm9  ;;  %v85_v32 = vpop.xlane.xlu2 %84 }
 0x10d   :  { %v142_v12 = vsub.f32 1.0, %v141_v5  ;;  %269 = vlog2.f32 %v335_v52  ;;  %v266_v25 = vpop.eup %265  ;;  %v171_v26 = vmul.f32 0.6931472, %v264_v14  ;;  %v109_v29 = vmul.f32 %v108_v18, %v82_v10  ;;  %vm117_vm15 = vmor %vm115_vm12, %vm116_vm11 }
 0x10e   :  { %v112_v17 = vsub.f32 1.0, %v111_v8  ;;  %271 = vlog2.f32 %v71_v51  ;;  %v175_v45 = vmul.f32 0.6931472, %v266_v25  ;;  %v166_v49 = vand.u32 2147483648, %v351_v6  ;;  %v91_v51 = vpop.xlane.xlu1 %90 }
 0x10f   :  { %v143_v19 = vmul.f32 %v260_v63, %v142_v12  ;;  %273 = vlog2.f32 %v351_v6  ;;  %v180_v46 = vsub.f32 %v109_v29, %v171_v26  ;;  %v164_v53 = vand.u32 2147483647, %v351_v6 }
 0x110   :  { %v113_v22 = vmul.f32 %v262_v2, %v112_v17  ;;  %vm160_vm3 = vweird.f32 %v351_v6  ;;  %v167_v0 = vor.u32 1.1754944e-38, %v166_v49  ;;  %vm202_vm6 = vcmp.lt.s32.totalorder %v191_v58, 37 }
 0x111   :  { %v144_v27 = vadd.f32 %v260_v63, %v143_v19  ;;  %v209_v60 = vsel %vm208_vm1, %v180_v46, 0.0  ;;  %vm165_vm5 = vcmp.eq.f32.partialorder %v164_v53, 8.507059e+37  ;;  %v228_v24 = vand.u32 127, %v186_v62 }
 0x112   :  { %v268_v28 = vpop.eup %267  ;;  %v114_v33 = vadd.f32 %v262_v2, %v113_v22 }
 0x113   :  { %v270_v34 = vpop.eup %269  ;;  %v148_v35 = vsel %vm379_vm13, %v260_v63, %v144_v27  ;;  %v156_v37 = vmul.f32 %v268_v28, %v351_v6  ;;  %v88_v39 = vpop.xlane.xlu0 %87  ;;  %vm161_vm2 = vweird.f32 %v268_v28  ;;  %vm230_vm8 = vcmp.eq.s32.totalorder %v228_v24, 0 }
 0x114   :  { %v118_v40 = vsel %vm117_vm15, %v262_v2, %v114_v33  ;;  %v139_v41 = vmul.f32 %v138_v38, %v88_v39  ;;  %v153_v42 = vsel %vm150_vm14, %v152_v31, %v148_v35  ;;  %v173_v48 = vmul.f32 0.6931472, %v270_v34  ;;  %v272_v50 = vpop.eup %271  ;;  %vm162_vm4 = vmor %vm160_vm3, %vm161_vm2  ;;  %v94_v4 = vpop.xlane.xlu2 %93 }
 0x115   :  { %v123_v43 = vsel %vm120_vm0, %v122_v36, %v118_v40  ;;  %v157_v44 = vsub.f32 1.0, %v156_v37  ;;  %v154_v54 = vmul.f32 %v153_v42, %v91_v51  ;;  %v274_v59 = vpop.eup %273  ;;  %v177_v61 = vmul.f32 0.6931472, %v272_v50  ;;  %vm231_vm9 = vmand %vm229_vm7, %vm230_vm8 }
 0x116   :  { %v124_v47 = vmul.f32 %v123_v43, %v85_v32  ;;  %v182_v56 = vsub.f32 %v139_v41, %v175_v45  ;;  %v179_v6 = vmul.f32 0.6931472, %v274_v59 }
 0x117   :  { %v158_v52 = vmul.f32 %v268_v28, %v157_v44  ;;  %v183_v3 = vsub.f32 %v154_v54, %v177_v61 }
 0x118   :  { %v181_v55 = vsub.f32 %v124_v47, %v173_v48  ;;  %v212_v7 = vsel %vm208_vm1, %v182_v56, 0.0 }
 0x119   :  { %v159_v57 = vadd.f32 %v268_v28, %v158_v52  ;;  %v214_v11 = vsel %vm208_vm1, %v183_v3, 0.0 }
 0x11a   :  { %v210_v63 = vsel %vm208_vm1, %v181_v55, 0.0 }
 0x11b   :  { %v211_v1 = vadd.f32 %v210_v63, %v209_v60  ;;  %v163_v2 = vsel %vm162_vm4, %v268_v28, %v159_v57 }
 0x11c   :  { %v168_v5 = vsel %vm165_vm5, %v167_v0, %v163_v2 }
 0x11d   :  { %v169_v8 = vmul.f32 %v168_v5, %v94_v4  ;;  %v213_v9 = vadd.f32 %v212_v7, %v211_v1 }
 0x11f   :  { %v184_v10 = vsub.f32 %v169_v8, %v179_v6  ;;  %v215_v14 = vadd.f32 %v214_v11, %v213_v9 }
 0x121   :  { %v207_v12 = vsel %vm202_vm6, %v184_v10, 0.0 }
 0x122   :  { %v216_v15 = vsel %vm208_vm1, %v207_v12, 0.0 }
 0x123   :  { %v217_v16 = vadd.f32 %v216_v15, %v215_v14 }
 0x125   :  { %218 = vadd.xlane.f32.xlu0 %v217_v16 }
 0x198   :  { %v219_v17 = vpop.xlane.xlu0 %218 }
 0x199   :  { %v220_v18 = vrot.slane %v219_v17, 4 }
 0x19b   :  { %v221_v19 = vadd.f32 %v220_v18, %v219_v17 }
 0x19d   :  { %v222_v20 = vrot.slane %v221_v19, 2 }
 0x19f   :  { %v223_v21 = vadd.f32 %v222_v20, %v221_v19 }
 0x1a1   :  { %v224_v22 = vrot.slane %v223_v21, 1 }
 0x1a3   :  { %v225_v23 = vadd.f32 %v224_v22, %v223_v21 }
 0x1a5   :  { %240 = vpush %v225_v23 }
 0x1d6   :  { %s241_s0 = spop %240 }
 0x1d7   :  { %v232_v25 = vstv %s241_s0 }
 0x1d8   :  { %v233_v26 = vsel %vm231_vm9, %v232_v25, 0.0 }
 0x1d9   :  { %234 = vst [vmem:[%s405_s1] sm:$0xff] %v233_v26 }
 0x1da   :  { %239 = vsyncpa [#allocation3], 1 }

</bundles_post_ra>
